<compile_context>
chip_gen: v6e
topology: v6e:2x2x1
jax: 0.10.0
libtpu: 0.0.40
codegen_flags: <defaults>
</compile_context>

<pallas_src>
import jax
import jax.numpy as jnp
from jax.experimental import pallas as pl
from jax.experimental.pallas import tpu as pltpu

_HIGHEST = jax.lax.Precision.HIGHEST


# ---------------------------------------------------------------------------
# In-kernel helpers
# ---------------------------------------------------------------------------
def _scores(x, v):
    # x: (bt, Sblk, C) f32, v: (bt, 1, C) f32  ->  (bt, 1, Sblk) f32  (MXU)
    return jnp.einsum("bnc,bsc->bns", v, x,
                      preferred_element_type=jnp.float32, precision=_HIGHEST)


def _weighted_sum(p, x):
    # p: (bt, 1, Sblk) f32, x: (bt, Sblk, C) f32 -> (bt, 1, C) f32  (MXU)
    return jnp.einsum("bns,bsc->bnc", p, x,
                      preferred_element_type=jnp.float32, precision=_HIGHEST)


def _softmax_attend(x, s, o_ref):
    # Single-pass softmax over the full sequence (lane axis of s).
    s_max = jnp.max(s, axis=-1, keepdims=True)
    e = jnp.exp(s - s_max)
    p = e * pl.reciprocal(jnp.sum(e, axis=-1, keepdims=True), approx=False)
    o_ref[...] = _weighted_sum(p, x).astype(o_ref.dtype)


def _online_update(x, s, o_ref, m_sc, l_sc, acc_sc):
    # Online-softmax accumulation across the S grid axis (axis 1, "arbitrary").
    si = pl.program_id(1)

    @pl.when(si == 0)
    def _():
        m_sc[...] = jnp.full(m_sc.shape, -jnp.inf, jnp.float32)
        l_sc[...] = jnp.zeros(l_sc.shape, jnp.float32)
        acc_sc[...] = jnp.zeros(acc_sc.shape, jnp.float32)

    m_prev = m_sc[...]
    m_new = jnp.maximum(m_prev, jnp.max(s, axis=-1, keepdims=True))
    alpha = jnp.exp(m_prev - m_new)
    p = jnp.exp(s - m_new)
    l_sc[...] = alpha * l_sc[...] + jnp.sum(p, axis=-1, keepdims=True)
    acc_sc[...] = alpha * acc_sc[...] + _weighted_sum(p, x)
    m_sc[...] = m_new

    @pl.when(si == pl.num_programs(1) - 1)
    def _():
        o_ref[...] = (acc_sc[...] *
                      pl.reciprocal(l_sc[...], approx=False)).astype(o_ref.dtype)


# ---------------------------------------------------------------------------
# Kernels
# ---------------------------------------------------------------------------
def _col_awareness_kernel(x_ref, v_ref, o_ref):
    x = x_ref[...].astype(jnp.float32)          # (bt, S, C) native -> f32
    s = _scores(x, v_ref[...])                  # (bt, 1, S)
    _softmax_attend(x, s, o_ref)


def _col_awareness_masked_kernel(x_ref, v_ref, m_ref, o_ref):
    x = x_ref[...].astype(jnp.float32)
    s = _scores(x, v_ref[...])
    s = jnp.where(m_ref[...] != 0, s, jnp.float32(-100.0))   # torch: out2[~m]=-100
    _softmax_attend(x, s, o_ref)


def _col_awareness_stile_kernel(x_ref, v_ref, o_ref, m_sc, l_sc, acc_sc):
    x = x_ref[...].astype(jnp.float32)          # (bt, ts, C)
    s = _scores(x, v_ref[...])                  # (bt, 1, ts)
    _online_update(x, s, o_ref, m_sc, l_sc, acc_sc)


def _col_awareness_masked_stile_kernel(x_ref, v_ref, m_ref, o_ref,
                                       m_sc, l_sc, acc_sc):
    x = x_ref[...].astype(jnp.float32)
    s = _scores(x, v_ref[...])
    s = jnp.where(m_ref[...] != 0, s, jnp.float32(-100.0))
    _online_update(x, s, o_ref, m_sc, l_sc, acc_sc)


# ---------------------------------------------------------------------------
# Tiling plan
# ---------------------------------------------------------------------------
def _vmem_capacity_bytes():
    try:
        return int(pltpu.get_tpu_info().vmem_capacity_bytes)
    except Exception:
        return 64 << 20      # conservative default (v7x per-TC size)


def _plan_tiling(B, S, C, itemsize, *, masked):
    """Pick (batch_block, seq_block, vmem_capacity)."""
    vmem_cap = _vmem_capacity_bytes()
    # Budget for the input1 stream per grid step: double-buffered native tile
    # plus one in-kernel f32 copy.  ~40% of physical VMEM leaves headroom for
    # the v/mask/output streams and compiler temporaries.
    #   128 MiB (v5e/v6e) -> ~51 MiB ; 64 MiB (v7x) -> ~25 MiB.
    budget = max(int(0.40 * vmem_cap), 2 << 20)
    row_bytes = (2 * itemsize + 4) * C          # per (batch, seq) element

    # ---- batch block --------------------------------------------------------
    cap_rows = budget // max(S * row_bytes, 1)  # full-S batch rows that fit
    if B <= 8 or (B < 16 and cap_rows >= B):
        bt = B                                  # full-dim block is always legal
    else:
        # Keep >= 2 grid steps when B is large enough so the "parallel" batch
        # axis can be sharded across TensorCores (v7x megacore); one extra
        # ~0.35us step is noise on single-TC chips.
        limit = B if B < 16 else max(8, ((B // 2) // 8) * 8)
        cap_bt = min(limit, max(8, (cap_rows // 8) * 8))
        bt = 0
        for cand in range(8, cap_bt + 1, 8):    # prefer divisors of B
            if B % cand == 0:
                bt = cand
        if bt == 0:                             # sublane-aligned; wrapper pads B
            bt = max(8, min(cap_bt, (B // 8) * 8))

    # ---- seq block (online-softmax fallback for very large S*C) -------------
    ts = S
    if bt * S * row_bytes > budget:
        # Masked tiles need a lane-aligned (multiple-of-128) seq block so the
        # (bt, 1, ts) mask BlockSpec is legal; unmasked only needs sublane (8).
        step = 128 if masked else 8
        best = 0
        cand = step
        while cand < S:
            if S % cand == 0 and bt * cand * row_bytes <= budget:
                best = cand
            cand += step
        if best:
            ts = best
        # else: keep ts = S and rely on the raised vmem_limit_bytes.
        # TODO(synk): general ragged-S tiling (pad S + per-tile validity mask).
    return bt, ts, vmem_cap


# ---------------------------------------------------------------------------
# Public wrapper
# ---------------------------------------------------------------------------
def col_awareness(input1, input2, weight, input_mask=None, *,
                  block_b=None, block_s=None):
    """input1: [B,S,C], input2: [B,E], weight: [E,C],
    input_mask: optional [B,S] bool.  Returns [B,1,C] float32."""
    B, S, C = input1.shape
    E = input2.shape[-1]
    assert weight.shape == (E, C)
    itemsize = input1.dtype.itemsize
    masked = input_mask is not None

    # Collapse the E dimension outside the kernel (tiny [B,E]x[E,C] matmul):
    # v[b] = input2[b] @ weight, kept f32 and lane-dense as (B, 1, C).
    v = jnp.einsum("be,ec->bc", input2.astype(jnp.float32),
                   weight.astype(jnp.float32),
                   precision=_HIGHEST).reshape(B, 1, C)

    bt, ts, vmem_cap = _plan_tiling(B, S, C, itemsize, masked=masked)
    if block_b is not None:
        bt = block_b
    if block_s is not None:
        ts = block_s

    # Pad the batch so the (multiple-of-8) batch block divides it evenly.
    Bp = -(-B // bt) * bt
    x = input1
    # Mask kept int32: it is <= 1/C of the input1 bytes, and i32 blocks are
    # layout-safe for any bt.
    m = input_mask.astype(jnp.int32).reshape(B, 1, S) if masked else None
    if Bp != B:
        pad = ((0, Bp - B), (0, 0), (0, 0))
        x = jnp.pad(x, pad)
        v = jnp.pad(v, pad)
        if masked:
            m = jnp.pad(m, pad)
    nb = Bp // bt

    # Explicit VMEM limit: per-step estimate (x double-buffer + in-kernel f32
    # copy + v/mask/out/accumulator blocks) with ~50% headroom, capped at the
    # physical capacity.
    est = (bt * ts * C * (2 * itemsize + 4) + 2 * bt * S * 4
           + 8 * bt * C * 4 + (1 << 20))
    vmem_limit = int(min(vmem_cap, max(int(1.5 * est), 16 << 20)))

    out_shape = jax.ShapeDtypeStruct((Bp, 1, C), jnp.float32)

    if ts >= S:
        # ---- single-pass softmax, whole sequence resident per step ----------
        cparams = pltpu.CompilerParams(dimension_semantics=("parallel",),
                                       vmem_limit_bytes=vmem_limit)
        x_spec = pl.BlockSpec((bt, S, C), lambda b: (b, 0, 0))
        v_spec = pl.BlockSpec((bt, 1, C), lambda b: (b, 0, 0))
        o_spec = pl.BlockSpec((bt, 1, C), lambda b: (b, 0, 0))
        if not masked:
            out = pl.pallas_call(
                _col_awareness_kernel, out_shape=out_shape, grid=(nb,),
                in_specs=[x_spec, v_spec], out_specs=o_spec,
                compiler_params=cparams)(x, v)
        else:
            m_spec = pl.BlockSpec((bt, 1, S), lambda b: (b, 0, 0))
            out = pl.pallas_call(
                _col_awareness_masked_kernel, out_shape=out_shape, grid=(nb,),
                in_specs=[x_spec, v_spec, m_spec], out_specs=o_spec,
                compiler_params=cparams)(x, v, m)
    else:
        # ---- online-softmax path: S tiled on a trailing "arbitrary" axis ----
        assert S % ts == 0, "seq block must divide S"
        ns = S // ts
        cparams = pltpu.CompilerParams(
            dimension_semantics=("parallel", "arbitrary"),
            vmem_limit_bytes=vmem_limit)
        x_spec = pl.BlockSpec((bt, ts, C), lambda b, s: (b, s, 0))
        v_spec = pl.BlockSpec((bt, 1, C), lambda b, s: (b, 0, 0))
        o_spec = pl.BlockSpec((bt, 1, C), lambda b, s: (b, 0, 0))
        scratch = [pltpu.VMEM((bt, 1, 1), jnp.float32),   # running max
                   pltpu.VMEM((bt, 1, 1), jnp.float32),   # running denominator
                   pltpu.VMEM((bt, 1, C), jnp.float32)]   # running numerator
        if not masked:
            out = pl.pallas_call(
                _col_awareness_stile_kernel, out_shape=out_shape,
                grid=(nb, ns), in_specs=[x_spec, v_spec], out_specs=o_spec,
                scratch_shapes=scratch, compiler_params=cparams)(x, v)
        else:
            m_spec = pl.BlockSpec((bt, 1, ts), lambda b, s: (b, 0, s))
            out = pl.pallas_call(
                _col_awareness_masked_stile_kernel, out_shape=out_shape,
                grid=(nb, ns), in_specs=[x_spec, v_spec, m_spec],
                out_specs=o_spec, scratch_shapes=scratch,
                compiler_params=cparams)(x, v, m)

    return out[:B]


# ---------------------------------------------------------------------------
# Reference & self-test
# ---------------------------------------------------------------------------
def _xavier_uniform(key, shape):
    fan_out, fan_in = shape   # torch weight is (enc_features, col_features)
    bound = (6.0 / (fan_in + fan_out)) ** 0.5
    return jax.random.uniform(key, shape, jnp.float32, minval=-bound, maxval=bound)


def _reference(input1, input2, weight, input_mask=None):
    x = input1.astype(jnp.float32)
    out1 = jnp.einsum("bsc,ec->bse", x, weight.astype(jnp.float32),
                      precision=_HIGHEST)
    out2 = jnp.einsum("bse,be->bs", out1, input2.astype(jnp.float32),
                      precision=_HIGHEST)[..., None]                  # [B,S,1]
    if input_mask is not None:
        out2 = jnp.where(input_mask[..., None], out2, -100.0)
    p = jax.nn.softmax(jnp.swapaxes(out2, 1, -1), axis=2)             # [B,1,S]
    return jnp.einsum("bks,bsc->bkc", p, x, precision=_HIGHEST)       # [B,1,C]


def _check(name, out, ref):
    assert out.shape == ref.shape, f"{name}: shape {out.shape} vs {ref.shape}"
    assert bool(jnp.all(jnp.isfinite(out))), f"{name}: non-finite output"
    err = float(jnp.max(jnp.abs(out - ref)))
    assert jnp.allclose(out, ref, atol=5e-4, rtol=5e-4), f"{name}: max err {err}"


if __name__ == "__main__":
    key = jax.random.PRNGKey(0)
    k_w, k_x1, k_x2, k_m, k_y1, k_y2, k_z1, k_z2, k_zm = jax.random.split(key, 9)

    # Shapes consistent with the module: batch=2, seq=8, col_features=32,
    # enc_features=16.
    B, S, C, E = 2, 8, 32, 16
    weight = _xavier_uniform(k_w, (E, C))
    input1 = jax.random.normal(k_x1, (B, S, C), jnp.float32)
    input2 = jax.random.normal(k_x2, (B, E), jnp.float32)
    input_mask = jax.random.bernoulli(k_m, 0.7, (B, S))

    # 1) unmasked, single-pass path
    out = jax.block_until_ready(col_awareness(input1, input2, weight))
    _check("unmasked", out, _reference(input1, input2, weight))

    # 2) masked, single-pass path
    out = jax.block_until_ready(
        col_awareness(input1, input2, weight, input_mask=input_mask))
    _check("masked", out, _reference(input1, input2, weight, input_mask))

    # 3) unmasked online-softmax (S-tiled) path, forced small seq block
    x1 = jax.random.normal(k_y1, (B, 16, C), jnp.float32)
    x2 = jax.random.normal(k_y2, (B, E), jnp.float32)
    out = jax.block_until_ready(col_awareness(x1, x2, weight, block_s=8))
    _check("unmasked S-tiled", out, _reference(x1, x2, weight))

    # 4) masked online-softmax path (mask blocks use 128-aligned seq blocks)
    x1 = jax.random.normal(k_z1, (B, 256, C), jnp.float32)
    x2 = jax.random.normal(k_z2, (B, E), jnp.float32)
    m4 = jax.random.bernoulli(k_zm, 0.7, (B, 256))
    out = jax.block_until_ready(
        col_awareness(x1, x2, weight, input_mask=m4, block_s=128))
    _check("masked S-tiled", out, _reference(x1, x2, weight, m4))

    # 5) batch-padding path (B=12 on a batch block of 8 -> padded to 16)
    B2 = 12
    x1 = jax.random.normal(k_y1, (B2, S, C), jnp.float32)
    x2 = jax.random.normal(k_y2, (B2, E), jnp.float32)
    m5 = jax.random.bernoulli(k_zm, 0.7, (B2, S))
    out = jax.block_until_ready(
        col_awareness(x1, x2, weight, input_mask=m5, block_b=8))
    _check("masked padded-B", out, _reference(x1, x2, weight, m5))

    print("KERNEL_OK")
</pallas_src>

<mosaic_0001>
module attributes {stable_mosaic.version = 11 : i64} {
  func.func @_col_awareness_kernel(%arg0: i32, %arg1: memref<2x8x32xf32, #tpu.memory_space<vmem>>, %arg2: memref<2x1x32xf32, #tpu.memory_space<vmem>>, %arg3: memref<2x1x32xf32, #tpu.memory_space<vmem>>) attributes {dimension_semantics = [#tpu.dimension_semantics<parallel>], iteration_bounds = array<i64: 1>, scalar_prefetch = 0 : i64, scratch_operands = 0 : i64, tpu.core_type = #tpu.core_type<tc>, window_params = [{transform_indices = @transform_0, window_bounds = array<i64: 2, 8, 32>}, {transform_indices = @transform_1, window_bounds = array<i64: 2, 1, 32>}, {transform_indices = @transform_2, window_bounds = array<i64: 2, 1, 32>}]} {
    %c0 = arith.constant 0 : index
    %c0_0 = arith.constant 0 : index
    %c0_1 = arith.constant 0 : index
    %0 = vector.load %arg1[%c0, %c0_0, %c0_1] : memref<2x8x32xf32, #tpu.memory_space<vmem>>, vector<2x8x32xf32>
    %c0_2 = arith.constant 0 : index
    %c0_3 = arith.constant 0 : index
    %c0_4 = arith.constant 0 : index
    %1 = vector.load %arg2[%c0_2, %c0_3, %c0_4] : memref<2x1x32xf32, #tpu.memory_space<vmem>>, vector<2x1x32xf32>
    "tpu.trace_start"() <{level = 10 : i32, message = "bnc,bsc->bns"}> : () -> ()
    %cst = arith.constant dense<0.000000e+00> : vector<2x1x8xf32>
    %2 = tpu.matmul %1, %0, %cst {dimension_numbers = #tpu.dot_dimension_numbers<[2], [2], [1], [1], [0, 0, 0, 1, 1, 1], [0], [0]>, precision = #tpu.contract_precision<fp32>} : vector<2x1x32xf32>, vector<2x8x32xf32>, vector<2x1x8xf32> -> vector<2x1x8xf32>
    "tpu.trace_stop"() : () -> ()
    %cst_5 = arith.constant dense<0xFF800000> : vector<2x1xf32>
    %3 = vector.multi_reduction <maximumf>, %2, %cst_5 [2] : vector<2x1x8xf32> to vector<2x1xf32>
    %4 = vector.shape_cast %3 : vector<2x1xf32> to vector<2x1x1xf32>
    %5 = vector.broadcast %4 : vector<2x1x1xf32> to vector<2x1x8xf32>
    %6 = arith.subf %2, %5 : vector<2x1x8xf32>
    %7 = math.exp %6 : vector<2x1x8xf32>
    %cst_6 = arith.constant dense<0.000000e+00> : vector<2x1xf32>
    %8 = vector.multi_reduction <add>, %7, %cst_6 [2] : vector<2x1x8xf32> to vector<2x1xf32>
    %9 = vector.shape_cast %8 : vector<2x1xf32> to vector<2x1x1xf32>
    %10 = tpu.reciprocal %9 : vector<2x1x1xf32> -> vector<2x1x1xf32>
    %11 = vector.broadcast %10 : vector<2x1x1xf32> to vector<2x1x8xf32>
    %12 = arith.mulf %7, %11 : vector<2x1x8xf32>
    "tpu.trace_start"() <{level = 10 : i32, message = "bns,bsc->bnc"}> : () -> ()
    %cst_7 = arith.constant dense<0.000000e+00> : vector<2x1x32xf32>
    %13 = tpu.matmul %12, %0, %cst_7 {dimension_numbers = #tpu.dot_dimension_numbers<[2], [1], [1], [2], [0, 0, 0, 1, 1, 2], [0], [0]>, precision = #tpu.contract_precision<fp32>} : vector<2x1x8xf32>, vector<2x8x32xf32>, vector<2x1x32xf32> -> vector<2x1x32xf32>
    "tpu.trace_stop"() : () -> ()
    %c0_8 = arith.constant 0 : index
    %c0_9 = arith.constant 0 : index
    %c0_10 = arith.constant 0 : index
    %14 = vector.load %arg3[%c0_8, %c0_9, %c0_10] : memref<2x1x32xf32, #tpu.memory_space<vmem>>, vector<2x1x32xf32>
    tpu.vector_store %arg3[%c0_8, %c0_9, %c0_10], %13 {strides = array<i32>} : memref<2x1x32xf32, #tpu.memory_space<vmem>>, vector<2x1x32xf32>,
    return
  }
  func.func @transform_0(%arg0: i32) -> (i32, i32, i32) {
    %c0_i32 = arith.constant 0 : i32
    %c0_i32_0 = arith.constant 0 : i32
    %c0_i32_1 = arith.constant 0 : i32
    return %arg0, %c0_i32, %c0_i32_0 : i32, i32, i32
  }
  func.func @transform_1(%arg0: i32) -> (i32, i32, i32) {
    %c0_i32 = arith.constant 0 : i32
    %c0_i32_0 = arith.constant 0 : i32
    %c0_i32_1 = arith.constant 0 : i32
    return %arg0, %c0_i32, %c0_i32_0 : i32, i32, i32
  }
  func.func @transform_2(%arg0: i32) -> (i32, i32, i32) {
    %c0_i32 = arith.constant 0 : i32
    %c0_i32_0 = arith.constant 0 : i32
    %c0_i32_1 = arith.constant 0 : i32
    return %arg0, %c0_i32, %c0_i32_0 : i32, i32, i32
  }
}

</mosaic_0001>

<bundles_post_ra>
// kernel: tpu_custom_call.1
= control target key start
LH: loop header
LB: loop body
LE: loop exit
PB: predicated region body
PF: predicated region fallthrough
CT: control target
= control target key end

     0   :  { %7 = vsyncpa [#allocation3], 0  ;;  %s2278_s0 = inlined_call_operand.hbm [shape: f32[2,8,32], index: 0, kind: input, shape index: {}]   ;;  %s2279_s1 = inlined_call_operand.hbm [shape: f32[2,1,32], index: 1, kind: input, shape index: {}]   ;;  %s2280_s2 = inlined_call_operand.hbm [shape: f32[2,1,32], index: 2, kind: output, shape index: {}]  }
   0x1   :  { %8 = vsyncpa [#allocation6], 0 }
   0x2   :  { %9 = vsyncpa [#allocation4], 0  ;;  %s2143_s9 = smov [#allocation2]  }
   0x3   :  { %s15_s10 = sshll.u32 %s2143_s9, 4  ;;  %s16_s10 = int_to_ptr.vmem [resolvable:$true] %s15_s10 }
   0x4   :  { %s2085_s11 = scalar_lea.vmem %s16_s10, 256  ;;  %p2090_p1 = scmp.lt.s32.totalorder %s16_s10, %s16_s10 }
   0x5   :  { %p2086_p0 = scmp.ne.s32.totalorder %s16_s10, %s2085_s11  ;;  %p2091_p2 = scmp.lt.s32.totalorder %s2085_s11, %s2085_s11 }
   0x7   :  { %p2092_p3 = por %p2091_p2, %p2090_p1 }
   0x9   :  { %p2093_p4 = pnand %p2092_p3, %p2086_p0 }
   0xb   :  { %2096 = shalt.err (!%p2093_p4)
}
   0xc   :  { %s2144_s12 = smov 128   ;;  %s2145_s13 = smov 8  }
   0xd   :  { %21 = dma.hbm_to_vmem [thread:$0]  %s2278_s0, 256, %s16_s10, [#allocation3], %s2144_s12, %s2144_s12, %s2145_s13  }
   0xe   :  { %s2146_s16 = smov [#allocation5]  }
   0xf   :  { %s27_s17 = sshll.u32 %s2146_s16, 4  ;;  %s28_s17 = int_to_ptr.vmem [resolvable:$true] %s27_s17 }
  0x10   :  { %s2105_s18 = scalar_lea.vmem %s28_s17, 32  ;;  %p2110_p6 = scmp.lt.s32.totalorder %s28_s17, %s28_s17 }
  0x11   :  { %p2106_p5 = scmp.ne.s32.totalorder %s28_s17, %s2105_s18  ;;  %p2111_p7 = scmp.lt.s32.totalorder %s2105_s18, %s2105_s18 }
  0x13   :  { %p2112_p8 = por %p2111_p7, %p2110_p6 }
  0x15   :  { %p2113_p9 = pnand %p2112_p8, %p2106_p5 }
  0x17   :  { %2116 = shalt.err (!%p2113_p9)
}
  0x18   :  { %s2147_s19 = smov 16   ;;  %s2148_s20 = smov 1  }
  0x19   :  { %33 = dma.hbm_to_vmem [thread:$0]  %s2279_s1, 32, %s28_s17, [#allocation6], %s2147_s19, %s2147_s19, %s2148_s20  }
  0x1a   :  { %2137 = dma.done.wait [#allocation3], 256  }
  0x1b   :  { %2138 = vsyncadd [#allocation3], 4294967040 }
  0x1c   :  { %2139 = dma.done.wait [#allocation6], 32  }
  0x1d   :  { %2140 = vsyncadd [#allocation6], 4294967264  ;;  %v2149_v0 = vmov 0.0   ;;  %vm2150_vm0 = vmmov 0   ;;  %vm44_vm1 = vcmask 261120   ;;  %v2182_v1 = vld [vmem:[#allocation2] sm:$0xff] }
  0x1e   :  { %1940 = vmatprep.subr.mxu0 %v2149_v0  ;;  %1942 = vmatprep.mubr.msk.f32.mxu0 %vm2150_vm0, %v2149_v0  ;;  %v42_v2 = vld [vmem:[#allocation5] sm:$0x1]  ;;  %v2184_v3 = vld [vmem:[#allocation2 + $0x8] sm:$0xff]  ;;  %v49_v4 = vsel %vm44_vm1, %v2182_v1, 0  ;;  %v43_v7 = vld [vmem:[#allocation5 + $0x1] sm:$0x1] }
  0x1f   :  { %1945 = vmatprep.subr.mxu1 %v2149_v0  ;;  %1947 = vmatprep.mubr.msk.f32.mxu1 %vm2150_vm0, %v2149_v0  ;;  %v46_v5 = vsel %vm44_vm1, %v42_v2, 0  ;;  %v501_v6 = vsel %vm44_vm1, %v2184_v3, 0  ;;  %v82_v8 = vand.u32 4294901760, %v49_v4  ;;  %v498_v10 = vsel %vm44_vm1, %v43_v7, 0  ;;  %s2151_s0 = smov [#allocation7]  }
  0x20   :  { %v117_v9 = vand.u32 4294901760, %v46_v5  ;;  %v534_v13 = vand.u32 4294901760, %v501_v6  ;;  %v569_v14 = vand.u32 4294901760, %v498_v10  ;;  %v2218_v29 = vand.u32 4294901760, %v2182_v1  ;;  %s1879_s1 = sshll.u32 %s2151_s0, 4  ;;  %s1880_s1 = int_to_ptr.vmem [resolvable:$true] %s1879_s1 }
  0x21   :  { %1941 = vmatpush3.xpose.msra.mxu0 %v82_v8  ;;  %v159_v12 = vsub.f32 %v49_v4, %v82_v8  ;;  %vm949_vm2 = vcmask 57344   ;;  %vm972_vm3 = vcmask 64512   ;;  %vm1871_vm4 = vcmask 253952   ;;  %s2117_s23 = scalar_lea.vmem %s1880_s1, 32  ;;  %p2122_p11 = scmp.lt.s32.totalorder %s1880_s1, %s1880_s1 }
  0x22   :  { %v118_v11 = vsub.f32 %v46_v5, %v117_v9  ;;  %1950 = vmatprep.subr.mxu0 %v2149_v0  ;;  %v611_v19 = vsub.f32 %v501_v6, %v534_v13  ;;  %v570_v20 = vsub.f32 %v498_v10, %v569_v14  ;;  %p2118_p10 = scmp.ne.s32.totalorder %s1880_s1, %s2117_s23  ;;  %p2123_p12 = scmp.lt.s32.totalorder %s2117_s23, %s2117_s23 }
  0x23   :  { %v160_v16 = vand.u32 4294901760, %v159_v12 }
  0x24   :  { %v119_v15 = vand.u32 4294901760, %v118_v11  ;;  %v571_v23 = vand.u32 4294901760, %v570_v20  ;;  %v612_v24 = vand.u32 4294901760, %v611_v19  ;;  %p2124_p13 = por %p2123_p12, %p2122_p11 }
  0x25   :  { %v161_v18 = vsub.f32 %v159_v12, %v160_v16 }
  0x26   :  { %v120_v17 = vsub.f32 %v118_v11, %v119_v15  ;;  %v572_v25 = vsub.f32 %v570_v20, %v571_v23  ;;  %v613_v26 = vsub.f32 %v611_v19, %v612_v24  ;;  %p2125_p0 = pnand %p2124_p13, %p2118_p10 }
  0x27   :  { %v162_v22 = vand.u32 4294901760, %v161_v18 }
  0x28   :  { %v121_v21 = vand.u32 4294901760, %v120_v17  ;;  %v573_v27 = vand.u32 4294901760, %v572_v25  ;;  %v614_v28 = vand.u32 4294901760, %v613_v26 }
  0x29   :  { %1946 = vmatpush3.xpose.msra.mxu1 %v162_v22 }
  0x2a   :  { %1943 = vmatmul.mubr.f32.vlgmr.msra.gmra.mxu0 %v121_v21  ;;  %1955 = vmatprep.subr.mxu1 %v2149_v0 }
  0x2b   :  { %1951 = vmatpush3.xpose.msra.mxu0 %v159_v12  ;;  %1952 = vmatprep.mubr.msk.f32.mxu0 %vm2150_vm0, %v2149_v0 }
  0x2c   :  { %1960 = vmatprep.subr.mxu0 %v2149_v0  ;;  %1948 = vmatmul.mubr.f32.vlgmr.msra.gmra.mxu1 %v117_v9 }
  0x2d   :  { %1956 = vmatpush3.xpose.msra.mxu1 %v82_v8  ;;  %1957 = vmatprep.mubr.msk.f32.mxu1 %vm2150_vm0, %v2149_v0 }
  0x2e   :  { %1953 = vmatmul.mubr.f32.vlgmr.msra.gmra.mxu0 %v118_v11  ;;  %1965 = vmatprep.subr.mxu1 %v2149_v0 }
  0x2f   :  { %1961 = vmatpush3.xpose.msra.mxu0 %v160_v16  ;;  %1962 = vmatprep.mubr.msk.f32.mxu0 %vm2150_vm0, %v2149_v0 }
  0x30   :  { %1958 = vmatmul.mubr.f32.vlgmr.msra.gmra.mxu1 %v119_v15  ;;  %1970 = vmatprep.subr.mxu0 %v2149_v0  ;;  %v1084_v15 = vsub.f32 %v2182_v1, %v2218_v29 }
  0x31   :  { %1966 = vmatpush3.xpose.msra.mxu1 %v82_v8  ;;  %1967 = vmatprep.mubr.msk.f32.mxu1 %vm2150_vm0, %v2149_v0 }
  0x32   :  { %1963 = vmatmul.mubr.f32.vlgmr.msra.gmra.mxu0 %v117_v9  ;;  %1975 = vmatprep.subr.mxu1 %v2149_v0  ;;  %v1085_v16 = vand.u32 4294901760, %v1084_v15 }
  0x33   :  { %1971 = vmatpush3.xpose.msra.mxu0 %v534_v13  ;;  %1972 = vmatprep.mubr.msk.f32.mxu0 %vm2150_vm0, %v2149_v0 }
  0x34   :  { %1968 = vmatmul.mubr.f32.vlgmr.msra.gmra.mxu1 %v117_v9  ;;  %1980 = vmatprep.subr.mxu0 %v2149_v0  ;;  %v1086_v17 = vsub.f32 %v1084_v15, %v1085_v16 }
  0x35   :  { %1976 = vmatpush3.xpose.msra.mxu1 %v614_v28  ;;  %1977 = vmatprep.mubr.msk.f32.mxu1 %vm2150_vm0, %v2149_v0 }
  0x36   :  { %1973 = vmatmul.mubr.f32.vlgmr.msra.gmra.mxu0 %v573_v27  ;;  %1985 = vmatprep.subr.mxu1 %v2149_v0  ;;  %v1087_v18 = vand.u32 4294901760, %v1086_v17 }
  0x37   :  { %1981 = vmatpush3.xpose.msra.mxu0 %v611_v19  ;;  %1982 = vmatprep.mubr.msk.f32.mxu0 %vm2150_vm0, %v2149_v0 }
  0x38   :  { %1978 = vmatmul.mubr.f32.vlgmr.msra.gmra.mxu1 %v569_v14  ;;  %1990 = vmatprep.subr.mxu0 %v2149_v0 }
  0x39   :  { %1986 = vmatpush3.xpose.msra.mxu1 %v534_v13  ;;  %1987 = vmatprep.mubr.msk.f32.mxu1 %vm2150_vm0, %v2149_v0 }
  0x3a   :  { %1983 = vmatmul.mubr.f32.vlgmr.msra.gmra.mxu0 %v570_v20  ;;  %1995 = vmatprep.subr.mxu1 %v2149_v0  ;;  %v1456_v20 = vand.u32 4294901760, %v2184_v3 }
  0x3b   :  { %1991 = vmatpush3.xpose.msra.mxu0 %v612_v24  ;;  %1992 = vmatprep.mubr.msk.f32.mxu0 %vm2150_vm0, %v2149_v0 }
  0x3c   :  { %1988 = vmatmul.mubr.f32.vlgmr.msra.gmra.mxu1 %v571_v23  ;;  %2000 = vmatprep.subr.mxu0 %v2149_v0  ;;  %v1533_v23 = vsub.f32 %v2184_v3, %v1456_v20 }
  0x3d   :  { %1996 = vmatpush3.xpose.msra.mxu1 %v534_v13  ;;  %1997 = vmatprep.mubr.msk.f32.mxu1 %vm2150_vm0, %v2149_v0 }
  0x3e   :  { %1993 = vmatmul.mubr.f32.vlgmr.msra.gmra.mxu0 %v569_v14  ;;  %2005 = vmatprep.subr.mxu1 %v2149_v0  ;;  %v1534_v26 = vand.u32 4294901760, %v1533_v23 }
  0x3f   :  { %2001 = vmatpush3.msra.mxu0 %v2218_v29  ;;  %2002 = vmatprep.mubr.msk.f32.mxu0 %vm2150_vm0, %v2149_v0 }
  0x40   :  { %1998 = vmatmul.mubr.f32.vlgmr.msra.gmra.mxu1 %v569_v14  ;;  %2010 = vmatprep.subr.mxu0 %v2149_v0 }
  0x41   :  { %2007 = vmatprep.mubr.msk.f32.mxu1 %vm2150_vm0, %v2149_v0  ;;  %2006 = vmatpush3.msra.mxu1 %v1087_v18 }
  0x42   :  { %2015 = vmatprep.subr.mxu1 %v2149_v0 }
  0xea   :  { %v123_v30 = vpop.f32.mrf.mxu0 }
  0xec   :  { %v1944_v31 = vpop.f32.mrf.mxu0  ;;  %v199_v32 = vpop.f32.mrf.mxu1 }
  0xed   :  { %v200_v33 = vadd.f32 %v199_v32, %v123_v30  ;;  %v1535_v30 = vsub.f32 %v1533_v23, %v1534_v26 }
  0xee   :  { %v273_v34 = vpop.f32.mrf.mxu0  ;;  %v1949_v35 = vpop.f32.mrf.mxu1 }
  0xef   :  { %v274_v36 = vadd.f32 %v273_v34, %v200_v33  ;;  %v1536_v33 = vand.u32 4294901760, %v1535_v30 }
  0xf0   :  { %v1954_v37 = vpop.f32.mrf.mxu0  ;;  %v347_v38 = vpop.f32.mrf.mxu1 }
  0xf1   :  { %v348_v39 = vadd.f32 %v347_v38, %v274_v36 }
  0xf2   :  { %v421_v40 = vpop.f32.mrf.mxu0  ;;  %v1959_v41 = vpop.f32.mrf.mxu1 }
  0xf3   :  { %v422_v42 = vadd.f32 %v421_v40, %v348_v39 }
  0xf4   :  { %v1964_v43 = vpop.f32.mrf.mxu0  ;;  %v493_v44 = vpop.f32.mrf.mxu1 }
  0xf5   :  { %v494_v45 = vadd.f32 %v493_v44, %v422_v42 }
  0xf6   :  { %v575_v46 = vpop.f32.mrf.mxu0  ;;  %v1969_v47 = vpop.f32.mrf.mxu1 }
  0xf7   :  { %v950_v49 = vsel %vm949_vm2, %v494_v45, -inf }
  0xf8   :  { %v1974_v48 = vpop.f32.mrf.mxu0  ;;  %v651_v50 = vpop.f32.mrf.mxu1  ;;  %951 = vmax.xlane.f32.xlu0 %v950_v49 }
  0xf9   :  { %v652_v51 = vadd.f32 %v651_v50, %v575_v46 }
  0xfa   :  { %v725_v52 = vpop.f32.mrf.mxu0  ;;  %v1979_v53 = vpop.f32.mrf.mxu1 }
  0xfb   :  { %v726_v54 = vadd.f32 %v725_v52, %v652_v51 }
  0xfc   :  { %v1984_v55 = vpop.f32.mrf.mxu0  ;;  %v799_v56 = vpop.f32.mrf.mxu1 }
  0xfd   :  { %v800_v57 = vadd.f32 %v799_v56, %v726_v54 }
  0xfe   :  { %v873_v58 = vpop.f32.mrf.mxu0  ;;  %v1989_v59 = vpop.f32.mrf.mxu1 }
  0xff   :  { %v874_v60 = vadd.f32 %v873_v58, %v800_v57 }
 0x100   :  { %v1994_v61 = vpop.f32.mrf.mxu0  ;;  %v945_v62 = vpop.f32.mrf.mxu1 }
 0x101   :  { %v946_v63 = vadd.f32 %v945_v62, %v874_v60 }
 0x102   :  { %v1999_v2 = vpop.f32.mrf.mxu1 }
 0x103   :  { %v953_v4 = vsel %vm949_vm2, %v946_v63, -inf }
 0x104   :  { %954 = vmax.xlane.f32.xlu0 %v953_v4 }
 0x181   :  { %v952_v5 = vpop.xlane.xlu0 %951 }
 0x182   :  { %v956_v6 = vsub.f32 %v494_v45, %v952_v5 }
 0x184   :  { %v958_v7 = vmul.f32 1.442695, %v956_v6 }
 0x186   :  { %2069 = vpow2.f32 %v958_v7 }
 0x18d   :  { %v955_v8 = vpop.xlane.xlu0 %954 }
 0x18e   :  { %v957_v9 = vsub.f32 %v946_v63, %v955_v8 }
 0x190   :  { %v960_v10 = vmul.f32 1.442695, %v957_v9 }
 0x192   :  { %2071 = vpow2.f32 %v960_v10 }
 0x193   :  { %v2070_v11 = vpop.eup %2069 }
 0x194   :  { %v962_v12 = vsel %vm949_vm2, %v2070_v11, 0.0 }
 0x195   :  { %963 = vadd.xlane.f32.xlu1 %v962_v12 }
 0x19f   :  { %v2072_v13 = vpop.eup %2071 }
 0x1a0   :  { %v965_v14 = vsel %vm949_vm2, %v2072_v13, 0.0 }
 0x1a1   :  { %966 = vadd.xlane.f32.xlu1 %v965_v14 }
 0x21e   :  { %v964_v19 = vpop.xlane.xlu1 %963 }
 0x21f   :  { %2073 = vrcp.f32 %v964_v19 }
 0x22a   :  { %v967_v21 = vpop.xlane.xlu1 %966 }
 0x22b   :  { %2075 = vrcp.f32 %v967_v21 }
 0x22c   :  { %v2074_v22 = vpop.eup %2073 }
 0x22d   :  { %v970_v24 = vmul.f32 %v2074_v22, %v2070_v11 }
 0x22f   :  { %v974_v25 = vsel %vm972_vm3, %v970_v24, 0 }
 0x230   :  { %v1042_v1 = vand.u32 4294901760, %v974_v25 }
 0x232   :  { %v1043_v27 = vsub.f32 %v974_v25, %v1042_v1  ;;  %2008 = vmatmul.mubr.f32.vlgmr.msra.gmra.mxu1 %v1042_v1 }
 0x233   :  { %2016 = vmatpush3.msra.mxu1 %v2218_v29  ;;  %2017 = vmatprep.mubr.msk.f32.mxu1 %vm2150_vm0, %v2149_v0 }
 0x234   :  { %v1044_v28 = vand.u32 4294901760, %v1043_v27  ;;  %2025 = vmatprep.subr.mxu1 %v2149_v0 }
 0x236   :  { %2018 = vmatmul.mubr.f32.vlgmr.msra.gmra.mxu1 %v1044_v28  ;;  %v1045_v31 = vsub.f32 %v1043_v27, %v1044_v28 }
 0x237   :  { %2026 = vmatpush3.msra.mxu1 %v2218_v29  ;;  %2027 = vmatprep.mubr.msk.f32.mxu1 %vm2150_vm0, %v2149_v0 }
 0x238   :  { %v2076_v3 = vpop.eup %2075  ;;  %v1046_v32 = vand.u32 4294901760, %v1045_v31  ;;  %2035 = vmatprep.subr.mxu1 %v2149_v0 }
 0x239   :  { %v971_v34 = vmul.f32 %v2076_v3, %v2072_v13 }
 0x23a   :  { %2003 = vmatmul.mubr.f32.vlgmr.msra.gmra.mxu0 %v1046_v32  ;;  %2028 = vmatmul.mubr.f32.vlgmr.msra.gmra.mxu1 %v1042_v1 }
 0x23b   :  { %2011 = vmatpush3.msra.mxu0 %v1084_v15  ;;  %2012 = vmatprep.mubr.msk.f32.mxu0 %vm2150_vm0, %v2149_v0  ;;  %v1423_v35 = vsel %vm972_vm3, %v971_v34, 0 }
 0x23c   :  { %2036 = vmatpush3.msra.mxu1 %v1536_v33  ;;  %2037 = vmatprep.mubr.msk.f32.mxu1 %vm2150_vm0, %v2149_v0  ;;  %v1491_v29 = vand.u32 4294901760, %v1423_v35 }
 0x23d   :  { %2020 = vmatprep.subr.mxu0 %v2149_v0  ;;  %2045 = vmatprep.subr.mxu1 %v2149_v0 }
 0x23e   :  { %2013 = vmatmul.mubr.f32.vlgmr.msra.gmra.mxu0 %v1043_v27  ;;  %v1492_v36 = vsub.f32 %v1423_v35, %v1491_v29  ;;  %2038 = vmatmul.mubr.f32.vlgmr.msra.gmra.mxu1 %v1491_v29 }
 0x23f   :  { %2021 = vmatpush3.msra.mxu0 %v1085_v16  ;;  %2022 = vmatprep.mubr.msk.f32.mxu0 %vm2150_vm0, %v2149_v0 }
 0x240   :  { %2046 = vmatpush3.msra.mxu1 %v1456_v20  ;;  %2047 = vmatprep.mubr.msk.f32.mxu1 %vm2150_vm0, %v2149_v0  ;;  %v1493_v37 = vand.u32 4294901760, %v1492_v36 }
 0x241   :  { %2030 = vmatprep.subr.mxu0 %v2149_v0  ;;  %2055 = vmatprep.subr.mxu1 %v2149_v0 }
 0x242   :  { %2023 = vmatmul.mubr.f32.vlgmr.msra.gmra.mxu0 %v1042_v1  ;;  %2048 = vmatmul.mubr.f32.vlgmr.msra.gmra.mxu1 %v1493_v37  ;;  %v1494_v38 = vsub.f32 %v1492_v36, %v1493_v37 }
 0x243   :  { %2031 = vmatpush3.msra.mxu0 %v1456_v20  ;;  %2032 = vmatprep.mubr.msk.f32.mxu0 %vm2150_vm0, %v2149_v0 }
 0x244   :  { %2056 = vmatpush3.msra.mxu1 %v1456_v20  ;;  %2057 = vmatprep.mubr.msk.f32.mxu1 %vm2150_vm0, %v2149_v0  ;;  %v1495_v39 = vand.u32 4294901760, %v1494_v38 }
 0x245   :  { %2040 = vmatprep.subr.mxu0 %v2149_v0 }
 0x246   :  { %2033 = vmatmul.mubr.f32.vlgmr.msra.gmra.mxu0 %v1495_v39  ;;  %2058 = vmatmul.mubr.f32.vlgmr.msra.gmra.mxu1 %v1491_v29 }
 0x247   :  { %2041 = vmatpush3.msra.mxu0 %v1533_v23  ;;  %2042 = vmatprep.mubr.msk.f32.mxu0 %vm2150_vm0, %v2149_v0 }
 0x248   :  { %2050 = vmatprep.subr.mxu0 %v2149_v0 }
 0x24a   :  { %2043 = vmatmul.mubr.f32.vlgmr.msra.gmra.mxu0 %v1492_v36 }
 0x24b   :  { %2051 = vmatpush3.msra.mxu0 %v1534_v26  ;;  %2052 = vmatprep.mubr.msk.f32.mxu0 %vm2150_vm0, %v2149_v0 }
 0x24e   :  { %2053 = vmatmul.mubr.f32.vlgmr.msra.gmra.mxu0 %v1491_v29 }
 0x2f2   :  { %v1124_v40 = vpop.f32.mrf.mxu1 }
 0x2f4   :  { %v2009_v41 = vpop.f32.mrf.mxu1 }
 0x2f6   :  { %v1272_v42 = vpop.f32.mrf.mxu1 }
 0x2f8   :  { %v2019_v43 = vpop.f32.mrf.mxu1 }
 0x2fa   :  { %v1048_v44 = vpop.f32.mrf.mxu0  ;;  %v1418_v45 = vpop.f32.mrf.mxu1 }
 0x2fb   :  { %v1125_v48 = vadd.f32 %v1124_v40, %v1048_v44 }
 0x2fc   :  { %v2004_v46 = vpop.f32.mrf.mxu0  ;;  %v2029_v47 = vpop.f32.mrf.mxu1 }
 0x2fe   :  { %v1198_v49 = vpop.f32.mrf.mxu0  ;;  %v1573_v50 = vpop.f32.mrf.mxu1 }
 0x2ff   :  { %v1199_v51 = vadd.f32 %v1198_v49, %v1125_v48 }
 0x300   :  { %v2014_v52 = vpop.f32.mrf.mxu0  ;;  %v2039_v53 = vpop.f32.mrf.mxu1 }
 0x301   :  { %v1273_v54 = vadd.f32 %v1272_v42, %v1199_v51 }
 0x302   :  { %v1346_v55 = vpop.f32.mrf.mxu0  ;;  %v1721_v56 = vpop.f32.mrf.mxu1 }
 0x303   :  { %v1347_v57 = vadd.f32 %v1346_v55, %v1273_v54 }
 0x304   :  { %v2024_v0 = vpop.f32.mrf.mxu0  ;;  %v2049_v58 = vpop.f32.mrf.mxu1 }
 0x305   :  { %v1419_v59 = vadd.f32 %v1418_v45, %v1347_v57 }
 0x306   :  { %v1497_v60 = vpop.f32.mrf.mxu0  ;;  %v1867_v61 = vpop.f32.mrf.mxu1 }
 0x307   :  { %1872 = vst.msk [vmem:[#allocation7] sm:$0x1] %vm1871_vm4, %v1419_v59  ;;  %v1574_v2 = vadd.f32 %v1573_v50, %v1497_v60 }
 0x308   :  { %v2034_v62 = vpop.f32.mrf.mxu0  ;;  %v2059_v63 = vpop.f32.mrf.mxu1 }
 0x30a   :  { %v1647_v4 = vpop.f32.mrf.mxu0 }
 0x30b   :  { %v1648_v5 = vadd.f32 %v1647_v4, %v1574_v2 }
 0x30c   :  { %v2044_v6 = vpop.f32.mrf.mxu0 }
 0x30d   :  { %v1722_v7 = vadd.f32 %v1721_v56, %v1648_v5 }
 0x30e   :  { %v1795_v8 = vpop.f32.mrf.mxu0 }
 0x30f   :  { %v1796_v9 = vadd.f32 %v1795_v8, %v1722_v7 }
 0x310   :  { %v2054_v10 = vpop.f32.mrf.mxu0 }
 0x311   :  { %v1868_v11 = vadd.f32 %v1867_v61, %v1796_v9 }
 0x313   :  { %1873 = vst.msk [vmem:[#allocation7 + $0x1] sm:$0x1] %vm1871_vm4, %v1868_v11 }
 0x314   :  { %2128 = shalt.err (!%p2125_p0)
}
 0x315   :  { %1885 = dma.vmem_to_hbm [thread:$0]  %s1880_s1, 32, %s2280_s2, [#allocation4], %s2147_s19, %s2147_s19, %s2148_s20  }
 0x316   :  { %2141 = dma.done.wait [#allocation4], 32  }
 0x317   :  { %2142 = vsyncadd [#allocation4], 4294967264 }
 0x318   :  { %1889 = vsyncpa [#allocation3], 1 }
 0x319   :  { %1890 = vsyncpa [#allocation6], 1 }
 0x31a   :  { %1891 = vsyncpa [#allocation4], 1 }

</bundles_post_ra>
